<compile_context>
chip_gen: v6e
topology: v6e:2x2x1
jax: 0.10.0
libtpu: 0.0.40
codegen_flags: <defaults>
</compile_context>

<pallas_src>
import math

import jax
import jax.numpy as jnp
from jax.experimental import pallas as pl
from jax.experimental.pallas import tpu as pltpu


def _round_up(x, m):
    return ((x + m - 1) // m) * m


# ---------------------------------------------------------------------------
# Kernel
# ---------------------------------------------------------------------------
def _bcq_actor_kernel(s_ref, a_ref, w1s_ref, w1a_ref, b1_ref,
                      w2_ref, b2_ref, w3_ref, b3_ref, out_ref):
    # fc1 + relu. W1 split into state/action panels (no in-kernel concat):
    # two accumulating bf16 MXU matmuls with f32 accumulation.
    h1 = jnp.dot(s_ref[...].astype(jnp.bfloat16), w1s_ref[...],
                 preferred_element_type=jnp.float32)
    h1 = h1 + jnp.dot(a_ref[...].astype(jnp.bfloat16), w1a_ref[...],
                      preferred_element_type=jnp.float32)
    h1 = jnp.maximum(h1 + b1_ref[...], 0.0)          # f32 epilogue

    # fc2 + relu (hidden padded to 128 -> lane-dense intermediates).
    h2 = jnp.dot(h1.astype(jnp.bfloat16), w2_ref[...],
                 preferred_element_type=jnp.float32)
    h2 = jnp.maximum(h2 + b2_ref[...], 0.0)

    # fc3 (identity out_fn because constrain_out=False). W3/b3 zero-padded to
    # a lane-dense 128-wide output -> unmasked vector stores.
    out = jnp.dot(h2.astype(jnp.bfloat16), w3_ref[...],
                  preferred_element_type=jnp.float32)
    out_ref[...] = (out + b3_ref[...]).astype(out_ref.dtype)


# ---------------------------------------------------------------------------
# Wrapper
# ---------------------------------------------------------------------------
def _select_tile(B, tile_b):
    tb = max(8, min(int(tile_b), 8192))   # cap sized against v7x's smaller VMEM
    tb = _round_up(tb, 8)                 # sublane divisibility (Mosaic (8,128))
    if B <= tb:
        tb = _round_up(max(B, 1), 8)      # small batch -> single grid step
    return tb


def _batch_dim_semantics(num_steps):
    """CORE_PARALLEL only helps (and only applies cleanly) on v7x's 2 TCs."""
    kind = ""
    try:
        kind = jax.devices()[0].device_kind.lower()
    except Exception:
        pass
    if "v7" in kind and num_steps >= 2 and num_steps % 2 == 0:
        return (pltpu.CORE_PARALLEL,)
    return ("parallel",)


def bcq_actor_forward(state, action, kparams, *, out_dim, tile_b=4096):
    """BCQActorNetwork forward with a batch-tiled Pallas kernel.

    state:   [B, state_dim]  f32
    action:  [B, action_dim] f32
    kparams: kernel-ready params from `prepare_kernel_params`
             (split/pre-transposed bf16 weights, hidden & out padded to 128).
    """
    B, state_dim = state.shape
    _, action_dim = action.shape

    w1s, w1a, b1 = kparams["w1s"], kparams["w1a"], kparams["b1"]
    w2t, b2 = kparams["w2t"], kparams["b2"]
    w3t, b3 = kparams["w3t"], kparams["b3"]
    assert w1s.shape[0] == state_dim and w1a.shape[0] == action_dim
    h_pad = w1s.shape[1]
    out_pad = w3t.shape[1]

    tb = _select_tile(B, tile_b)
    b_pad = _round_up(B, tb)
    if b_pad != B:
        pad = ((0, b_pad - B), (0, 0))
        state = jnp.pad(state, pad)
        action = jnp.pad(action, pad)
    steps = b_pad // tb

    resident = lambda i: (0, 0)   # weights/biases stay VMEM-resident over grid

    flops = 2 * b_pad * ((state_dim + action_dim) * h_pad
                         + h_pad * h_pad + h_pad * out_pad)
    bytes_accessed = (
        b_pad * (state_dim + action_dim) * 4          # inputs (f32)
        + b_pad * out_pad * 4                         # output (f32, padded)
        + (w1s.size + w1a.size + w2t.size + w3t.size) * 2   # bf16 weights
        + (b1.size + b2.size + b3.size) * 4)                # f32 biases

    out = pl.pallas_call(
        _bcq_actor_kernel,
        out_shape=jax.ShapeDtypeStruct((b_pad, out_pad), jnp.float32),
        grid=(steps,),
        in_specs=[
            pl.BlockSpec((tb, state_dim), lambda i: (i, 0)),   # state tile
            pl.BlockSpec((tb, action_dim), lambda i: (i, 0)),  # action tile
            pl.BlockSpec((state_dim, h_pad), resident),        # W1 state panel
            pl.BlockSpec((action_dim, h_pad), resident),       # W1 action panel
            pl.BlockSpec((1, h_pad), resident),                # b1 (padded)
            pl.BlockSpec((h_pad, h_pad), resident),            # W2^T (padded)
            pl.BlockSpec((1, h_pad), resident),                # b2 (padded)
            pl.BlockSpec((h_pad, out_pad), resident),          # W3^T (padded)
            pl.BlockSpec((1, out_pad), resident),              # b3 (padded)
        ],
        out_specs=pl.BlockSpec((tb, out_pad), lambda i: (i, 0)),
        compiler_params=pltpu.CompilerParams(
            dimension_semantics=_batch_dim_semantics(steps)),
        cost_estimate=pl.CostEstimate(flops=flops, transcendentals=0,
                                      bytes_accessed=bytes_accessed),
    )(state, action, w1s, w1a, b1, w2t, b2, w3t, b3)

    return out[:B, :out_dim]


# ---------------------------------------------------------------------------
# Parameter init (matches PyTorch reference) + one-time kernel relayout
# ---------------------------------------------------------------------------
def fanin_init(key, shape):
    """Matches the reference fanin_init: U(-1/sqrt(fanin), 1/sqrt(fanin))."""
    fanin = shape[1]
    lim = 1.0 / math.sqrt(fanin)
    return jax.random.uniform(key, shape, jnp.float32, -lim, lim)


def init_params(key, input_dim, out_dim, hidden_dim=64):
    """PyTorch-layout params: W [out_features, in_features], b [1, out]."""
    ks = jax.random.split(key, 6)
    w1 = fanin_init(ks[0], (hidden_dim, input_dim))
    w2 = fanin_init(ks[1], (hidden_dim, hidden_dim))
    lim3 = 1.0 / math.sqrt(hidden_dim)
    w3 = jax.random.uniform(ks[2], (out_dim, hidden_dim), jnp.float32, -lim3, lim3)
    lim1 = 1.0 / math.sqrt(input_dim)
    b1 = jax.random.uniform(ks[3], (1, hidden_dim), jnp.float32, -lim1, lim1)
    lim2 = 1.0 / math.sqrt(hidden_dim)
    b2 = jax.random.uniform(ks[4], (1, hidden_dim), jnp.float32, -lim2, lim2)
    b3 = jax.random.uniform(ks[5], (1, out_dim), jnp.float32, -lim3, lim3)
    return dict(w1=w1, b1=b1, w2=w2, b2=b2, w3=w3, b3=b3)


def prepare_kernel_params(params, state_dim, *, lane=128,
                          weight_dtype=jnp.bfloat16):
    """One-time relayout: transpose PyTorch [out,in] weights to [in,out], split
    W1 into state/action panels (avoids the input concat), zero-pad the hidden
    dim and the output dim to lane width, and cast weights to bf16 (biases stay
    f32 for the f32 VPU epilogue)."""
    hidden = params["w1"].shape[0]
    out_dim = params["w3"].shape[0]
    h_pad = _round_up(hidden, lane)
    out_pad = _round_up(out_dim, lane)

    w1t = jnp.pad(params["w1"].T, ((0, 0), (0, h_pad - hidden)))   # [in, h_pad]
    w1s = w1t[:state_dim].astype(weight_dtype)                     # [state_dim, h_pad]
    w1a = w1t[state_dim:].astype(weight_dtype)                     # [action_dim, h_pad]
    b1 = jnp.pad(params["b1"], ((0, 0), (0, h_pad - hidden)))

    w2t = jnp.pad(params["w2"].T,
                  ((0, h_pad - hidden), (0, h_pad - hidden))).astype(weight_dtype)
    b2 = jnp.pad(params["b2"], ((0, 0), (0, h_pad - hidden)))

    w3t = jnp.pad(params["w3"].T,
                  ((0, h_pad - hidden), (0, out_pad - out_dim))).astype(weight_dtype)
    b3 = jnp.pad(params["b3"], ((0, 0), (0, out_pad - out_dim)))

    return dict(w1s=w1s, w1a=w1a, b1=b1, w2t=w2t, b2=b2, w3t=w3t, b3=b3)


# ---------------------------------------------------------------------------
# References for the correctness check
# ---------------------------------------------------------------------------
def _reference_forward(state, action, p):
    """Exact f32 PyTorch-semantics reference."""
    x = jnp.concatenate([state, action], axis=1)
    h1 = jax.nn.relu(x @ p["w1"].T + p["b1"])
    h2 = jax.nn.relu(h1 @ p["w2"].T + p["b2"])
    return h2 @ p["w3"].T + p["b3"]


def _reference_forward_bf16(state, action, kp, out_dim):
    """Same bf16 rounding as the kernel (tight numerical check)."""
    h1 = jnp.dot(state.astype(jnp.bfloat16), kp["w1s"],
                 preferred_element_type=jnp.float32)
    h1 = h1 + jnp.dot(action.astype(jnp.bfloat16), kp["w1a"],
                      preferred_element_type=jnp.float32)
    h1 = jnp.maximum(h1 + kp["b1"], 0.0)
    h2 = jnp.dot(h1.astype(jnp.bfloat16), kp["w2t"],
                 preferred_element_type=jnp.float32)
    h2 = jnp.maximum(h2 + kp["b2"], 0.0)
    out = jnp.dot(h2.astype(jnp.bfloat16), kp["w3t"],
                  preferred_element_type=jnp.float32) + kp["b3"]
    return out[:, :out_dim]


# ---------------------------------------------------------------------------
# Demo / correctness check
# ---------------------------------------------------------------------------
if __name__ == "__main__":
    key = jax.random.PRNGKey(0)
    k_state, k_action, k_params = jax.random.split(key, 3)

    batch = 50                 # deliberately NOT a tile multiple (tests padding)
    state_dim = 24
    action_dim = 8
    input_dim = state_dim + action_dim   # fc1 input = concat(state, action)
    hidden_dim = 64
    out_dim = 8

    state = jax.random.normal(k_state, (batch, state_dim), jnp.float32)
    action = jax.random.normal(k_action, (batch, action_dim), jnp.float32)
    params = init_params(k_params, input_dim, out_dim, hidden_dim)
    kparams = prepare_kernel_params(params, state_dim)

    # Small tile so the demo actually exercises a multi-step batch grid.
    out = bcq_actor_forward(state, action, kparams, out_dim=out_dim, tile_b=16)
    out = jax.block_until_ready(out)

    assert out.shape == (batch, out_dim)

    # Tight check vs. a reference with identical bf16 rounding.
    ref_bf16 = _reference_forward_bf16(state, action, kparams, out_dim)
    assert jnp.allclose(out, ref_bf16, atol=1e-3, rtol=1e-3)

    # Semantic check vs. the exact f32 PyTorch-equivalent forward
    # (looser tolerance because kernel weights/activations are bf16 on the MXU).
    ref_f32 = _reference_forward(state, action, params)
    assert jnp.allclose(out, ref_f32, atol=5e-2, rtol=5e-2)

    print("KERNEL_OK")
</pallas_src>

<mosaic_0001>
module attributes {stable_mosaic.version = 11 : i64} {
  func.func @_bcq_actor_kernel(%arg0: i32, %arg1: memref<16x24xf32, #tpu.memory_space<vmem>>, %arg2: memref<16x8xf32, #tpu.memory_space<vmem>>, %arg3: memref<24x128xbf16, #tpu.memory_space<vmem>>, %arg4: memref<8x128xbf16, #tpu.memory_space<vmem>>, %arg5: memref<1x128xf32, #tpu.memory_space<vmem>>, %arg6: memref<128x128xbf16, #tpu.memory_space<vmem>>, %arg7: memref<1x128xf32, #tpu.memory_space<vmem>>, %arg8: memref<128x128xbf16, #tpu.memory_space<vmem>>, %arg9: memref<1x128xf32, #tpu.memory_space<vmem>>, %arg10: memref<16x128xf32, #tpu.memory_space<vmem>>) attributes {dimension_semantics = [#tpu.dimension_semantics<parallel>], iteration_bounds = array<i64: 4>, scalar_prefetch = 0 : i64, scratch_operands = 0 : i64, tpu.core_type = #tpu.core_type<tc>, window_params = [{transform_indices = @transform_0, window_bounds = array<i64: 16, 24>}, {transform_indices = @transform_1, window_bounds = array<i64: 16, 8>}, {pipeline_mode = #tpu.pipeline_mode<synchronous>, transform_indices = @transform_2, window_bounds = array<i64: 24, 128>}, {pipeline_mode = #tpu.pipeline_mode<synchronous>, transform_indices = @transform_3, window_bounds = array<i64: 8, 128>}, {pipeline_mode = #tpu.pipeline_mode<synchronous>, transform_indices = @transform_4, window_bounds = array<i64: 1, 128>}, {pipeline_mode = #tpu.pipeline_mode<synchronous>, transform_indices = @transform_5, window_bounds = array<i64: 128, 128>}, {pipeline_mode = #tpu.pipeline_mode<synchronous>, transform_indices = @transform_6, window_bounds = array<i64: 1, 128>}, {pipeline_mode = #tpu.pipeline_mode<synchronous>, transform_indices = @transform_7, window_bounds = array<i64: 128, 128>}, {pipeline_mode = #tpu.pipeline_mode<synchronous>, transform_indices = @transform_8, window_bounds = array<i64: 1, 128>}, {transform_indices = @transform_9, window_bounds = array<i64: 16, 128>}]} {
    %c0 = arith.constant 0 : index
    %c0_0 = arith.constant 0 : index
    %0 = vector.load %arg1[%c0, %c0_0] : memref<16x24xf32, #tpu.memory_space<vmem>>, vector<16x24xf32>
    %1 = arith.truncf %0 : vector<16x24xf32> to vector<16x24xbf16>
    %c0_1 = arith.constant 0 : index
    %c0_2 = arith.constant 0 : index
    %2 = vector.load %arg3[%c0_1, %c0_2] : memref<24x128xbf16, #tpu.memory_space<vmem>>, vector<24x128xbf16>
    %cst = arith.constant dense<0.000000e+00> : vector<16x128xf32>
    %3 = tpu.matmul %1, %2, %cst {dimension_numbers = #tpu.dot_dimension_numbers<[1], [0], [0], [1], [0, 0, 1, 1], [], []>} : vector<16x24xbf16>, vector<24x128xbf16>, vector<16x128xf32> -> vector<16x128xf32>
    %c0_3 = arith.constant 0 : index
    %c0_4 = arith.constant 0 : index
    %4 = vector.load %arg2[%c0_3, %c0_4] : memref<16x8xf32, #tpu.memory_space<vmem>>, vector<16x8xf32>
    %5 = arith.truncf %4 : vector<16x8xf32> to vector<16x8xbf16>
    %c0_5 = arith.constant 0 : index
    %c0_6 = arith.constant 0 : index
    %6 = vector.load %arg4[%c0_5, %c0_6] : memref<8x128xbf16, #tpu.memory_space<vmem>>, vector<8x128xbf16>
    %cst_7 = arith.constant dense<0.000000e+00> : vector<16x128xf32>
    %7 = tpu.matmul %5, %6, %cst_7 {dimension_numbers = #tpu.dot_dimension_numbers<[1], [0], [0], [1], [0, 0, 1, 1], [], []>} : vector<16x8xbf16>, vector<8x128xbf16>, vector<16x128xf32> -> vector<16x128xf32>
    %8 = arith.addf %3, %7 : vector<16x128xf32>
    %c0_8 = arith.constant 0 : index
    %c0_9 = arith.constant 0 : index
    %9 = vector.load %arg5[%c0_8, %c0_9] : memref<1x128xf32, #tpu.memory_space<vmem>>, vector<1x128xf32>
    %10 = vector.broadcast %9 : vector<1x128xf32> to vector<16x128xf32>
    %11 = arith.addf %8, %10 : vector<16x128xf32>
    %cst_10 = arith.constant 0.000000e+00 : f32
    %12 = vector.broadcast %cst_10 : f32 to vector<16x128xf32>
    %13 = arith.maximumf %11, %12 : vector<16x128xf32>
    %14 = arith.truncf %13 : vector<16x128xf32> to vector<16x128xbf16>
    %c0_11 = arith.constant 0 : index
    %c0_12 = arith.constant 0 : index
    %15 = vector.load %arg6[%c0_11, %c0_12] : memref<128x128xbf16, #tpu.memory_space<vmem>>, vector<128x128xbf16>
    %cst_13 = arith.constant dense<0.000000e+00> : vector<16x128xf32>
    %16 = tpu.matmul %14, %15, %cst_13 {dimension_numbers = #tpu.dot_dimension_numbers<[1], [0], [0], [1], [0, 0, 1, 1], [], []>} : vector<16x128xbf16>, vector<128x128xbf16>, vector<16x128xf32> -> vector<16x128xf32>
    %c0_14 = arith.constant 0 : index
    %c0_15 = arith.constant 0 : index
    %17 = vector.load %arg7[%c0_14, %c0_15] : memref<1x128xf32, #tpu.memory_space<vmem>>, vector<1x128xf32>
    %18 = vector.broadcast %17 : vector<1x128xf32> to vector<16x128xf32>
    %19 = arith.addf %16, %18 : vector<16x128xf32>
    %cst_16 = arith.constant 0.000000e+00 : f32
    %20 = vector.broadcast %cst_16 : f32 to vector<16x128xf32>
    %21 = arith.maximumf %19, %20 : vector<16x128xf32>
    %22 = arith.truncf %21 : vector<16x128xf32> to vector<16x128xbf16>
    %c0_17 = arith.constant 0 : index
    %c0_18 = arith.constant 0 : index
    %23 = vector.load %arg8[%c0_17, %c0_18] : memref<128x128xbf16, #tpu.memory_space<vmem>>, vector<128x128xbf16>
    %cst_19 = arith.constant dense<0.000000e+00> : vector<16x128xf32>
    %24 = tpu.matmul %22, %23, %cst_19 {dimension_numbers = #tpu.dot_dimension_numbers<[1], [0], [0], [1], [0, 0, 1, 1], [], []>} : vector<16x128xbf16>, vector<128x128xbf16>, vector<16x128xf32> -> vector<16x128xf32>
    %c0_20 = arith.constant 0 : index
    %c0_21 = arith.constant 0 : index
    %25 = vector.load %arg9[%c0_20, %c0_21] : memref<1x128xf32, #tpu.memory_space<vmem>>, vector<1x128xf32>
    %26 = vector.broadcast %25 : vector<1x128xf32> to vector<16x128xf32>
    %27 = arith.addf %24, %26 : vector<16x128xf32>
    %c0_22 = arith.constant 0 : index
    %c0_23 = arith.constant 0 : index
    %28 = vector.load %arg10[%c0_22, %c0_23] : memref<16x128xf32, #tpu.memory_space<vmem>>, vector<16x128xf32>
    tpu.vector_store %arg10[%c0_22, %c0_23], %27 {strides = array<i32>} : memref<16x128xf32, #tpu.memory_space<vmem>>, vector<16x128xf32>,
    return
  }
  func.func @transform_0(%arg0: i32) -> (i32, i32) {
    %c0_i32 = arith.constant 0 : i32
    %c0_i32_0 = arith.constant 0 : i32
    return %arg0, %c0_i32 : i32, i32
  }
  func.func @transform_1(%arg0: i32) -> (i32, i32) {
    %c0_i32 = arith.constant 0 : i32
    %c0_i32_0 = arith.constant 0 : i32
    return %arg0, %c0_i32 : i32, i32
  }
  func.func @transform_2(%arg0: i32) -> (i32, i32) {
    %c0_i32 = arith.constant 0 : i32
    %c0_i32_0 = arith.constant 0 : i32
    %c0_i32_1 = arith.constant 0 : i32
    return %c0_i32, %c0_i32_0 : i32, i32
  }
  func.func @transform_3(%arg0: i32) -> (i32, i32) {
    %c0_i32 = arith.constant 0 : i32
    %c0_i32_0 = arith.constant 0 : i32
    %c0_i32_1 = arith.constant 0 : i32
    return %c0_i32, %c0_i32_0 : i32, i32
  }
  func.func @transform_4(%arg0: i32) -> (i32, i32) {
    %c0_i32 = arith.constant 0 : i32
    %c0_i32_0 = arith.constant 0 : i32
    %c0_i32_1 = arith.constant 0 : i32
    return %c0_i32, %c0_i32_0 : i32, i32
  }
  func.func @transform_5(%arg0: i32) -> (i32, i32) {
    %c0_i32 = arith.constant 0 : i32
    %c0_i32_0 = arith.constant 0 : i32
    %c0_i32_1 = arith.constant 0 : i32
    return %c0_i32, %c0_i32_0 : i32, i32
  }
  func.func @transform_6(%arg0: i32) -> (i32, i32) {
    %c0_i32 = arith.constant 0 : i32
    %c0_i32_0 = arith.constant 0 : i32
    %c0_i32_1 = arith.constant 0 : i32
    return %c0_i32, %c0_i32_0 : i32, i32
  }
  func.func @transform_7(%arg0: i32) -> (i32, i32) {
    %c0_i32 = arith.constant 0 : i32
    %c0_i32_0 = arith.constant 0 : i32
    %c0_i32_1 = arith.constant 0 : i32
    return %c0_i32, %c0_i32_0 : i32, i32
  }
  func.func @transform_8(%arg0: i32) -> (i32, i32) {
    %c0_i32 = arith.constant 0 : i32
    %c0_i32_0 = arith.constant 0 : i32
    %c0_i32_1 = arith.constant 0 : i32
    return %c0_i32, %c0_i32_0 : i32, i32
  }
  func.func @transform_9(%arg0: i32) -> (i32, i32) {
    %c0_i32 = arith.constant 0 : i32
    %c0_i32_0 = arith.constant 0 : i32
    return %arg0, %c0_i32 : i32, i32
  }
}

</mosaic_0001>

<bundles_post_ra>
// kernel: tpu_custom_call.1
= control target key start
LH: loop header
LB: loop body
LE: loop exit
PB: predicated region body
PF: predicated region fallthrough
CT: control target
= control target key end

     0   :  { %14 = vsyncpa [#allocation3], 0  ;;  %s1292_s0 = inlined_call_operand.vmem [shape: f32[64,24], index: 0, kind: input, shape index: {}]   ;;  %s1293_s1 = inlined_call_operand.vmem [shape: f32[64,8], index: 1, kind: input, shape index: {}]   ;;  %s1294_s2 = inlined_call_operand.vmem [shape: bf16[24,128], index: 2, kind: input, shape index: {}]   ;;  %s1295_s3 = inlined_call_operand.vmem [shape: bf16[8,128], index: 3, kind: input, shape index: {}]   ;;  %s1296_s4 = inlined_call_operand.vmem [shape: f32[1,128], index: 4, kind: input, shape index: {}]   ;;  %s1297_s5 = inlined_call_operand.vmem [shape: bf16[128,128], index: 5, kind: input, shape index: {}]   ;;  %s1298_s6 = inlined_call_operand.vmem [shape: f32[1,128], index: 6, kind: input, shape index: {}]   ;;  %s1299_s7 = inlined_call_operand.vmem [shape: bf16[128,128], index: 7, kind: input, shape index: {}]   ;;  %s1300_s8 = inlined_call_operand.vmem [shape: f32[1,128], index: 8, kind: input, shape index: {}]   ;;  %s1301_s9 = inlined_call_operand.hbm [shape: f32[64,128], index: 9, kind: output, shape index: {}]  }
   0x1   :  { %16 = vsyncpa [#allocation3 + $0x1], 0  ;;  %s1095_s30 = smov 0   ;;  %s1097_s10 = smov 0  }
   0x2   :  { %s1099_s11 = smov 0   ;;  %s1101_s12 = smov 0  }
   0x3 LB: > { %s1116_s13 = sadd.s32 4294967295, %s1038_s12   ;;  %s802_s14 = sadd.s32 4294967294, %s1038_s12   ;;  %s1038_s12 = sphi %s1101_s12, %s1307_s12   ;;  %s1034_s11 = sphi %s1099_s11, %s1306_s11   ;;  %s1030_s10 = sphi %s1097_s10, %s1305_s10   ;;  %s1026_s30 = sphi %s1095_s30, %s1304_s30  }
   0x4   : > { %s1120_s15 = sadd.s32 1, %s1038_s12   ;;  %s228_s16 = sadd.s32 1, %s1034_s11 }
   0x5   : > { %s225_s17 = ssub.s32 %s1038_s12, %s1120_s15  ;;  %p238_p0 = scmp.ne.s32.totalorder %s1034_s11, %s1030_s10 }
   0x6   : > { %p226_p1 = scmp.eq.s32.totalorder %s225_s17, 0  ;;  %p239_p2 = scmp.eq.s32.totalorder %s1116_s13, 3 }
   0x7   : > { %p244_p3 = scmp.ne.s32.totalorder %s1030_s10, %s1026_s30  ;;  %p245_p4 = scmp.eq.s32.totalorder %s802_s14, 3 }
   0x8   : > { %s1131_s18 = scalar_select %p226_p1, %s1034_s11, %s228_s16  }
   0x9   : > { %p1133_p5 = por %p239_p2, %p238_p0  ;;  %p1137_p6 = por %p245_p4, %p244_p3 }
   0xa   : > { %p805_p7 = scmp.ge.s32.totalorder %s1038_s12, 1  ;;  %p302_p8 = scmp.lt.s32.totalorder %s1038_s12, 5 }
   0xc   : > { %p303_p9 = pnand %p805_p7, %p302_p8 }
   0xd   : > { %s807_s25 = sshll.u32 (!%p303_p9), %s1116_s13, 1  ;;  %s340_s23 = sand.u32 (!%p303_p9), 1, %s1030_s10  }
   0xe   : > { %306 = sbr.rel (%p303_p9) target bundleno = 649 (0x289), region = 56  ;;  %p344_p10 = scmp.lt.s32.totalorder (!%p303_p9), %s807_s25, 7 }
   0xf   : > { %s806_s24 = sshll.u32 (!%p303_p9), %s340_s23, 4  ;;  %s839_s29 = sshll.u32 (!%p303_p9), %s1116_s13, 8 }
  0x10   : > { %s342_s27 = scalar_lea.vmem (!%p303_p9), [#allocation2], %s806_s24  ;;  %s1250_s17 = scalar_lea.hbm (!%p303_p9), %s1301_s9, %s839_s29 }
  0x11   : > { %s1252_s21 = scalar_lea.sflag (!%p303_p9), [#allocation3], %s340_s23  ;;  %s1042_s13 = smov (!%p303_p9), [#allocation2]  }
  0x12   : > { %s982_s24 = sshll.u32 (!%p303_p9), %s1042_s13, 4  ;;  %s983_s24 = int_to_ptr.vmem [resolvable:$false] %s982_s24 }
  0x13   : > { %vm371_vm0 = vcmask 1043456   ;;  %v960_v0 = vld [vmem:[%s1294_s2 + $0x8] ss:$0 sps:$4 sm:$0xff]   ;;  %v1040_v1 = vmov 0.0   ;;  %v366_v2 = vld [vmem:[%s1295_s3] sm:$0xf] }
  0x14   : > { %869 = vmatprep.subr.bf16.mxu1 %v1040_v1  ;;  %863 = vmatprep.subr.bf16.mxu0 %v1040_v1  ;;  %v430_v3 = vsel %vm371_vm0, %v960_v0, 0  ;;  %v373_v4 = vsel %vm371_vm0, %v366_v2, 0  ;;  %v961_v5 = vld [vmem:[%s1294_s2] sm:$0xff]   ;;  %vm1041_vm1 = vmmov 0   ;;  %s1309_s25 = smov (!%p344_p10, %s807_s25), 7  ;;  %v962_v6 = vld [vmem:[%s1297_s5 + $0x38] sm:$0xff]  }
  0x15   : > { %870 = vmatpush3.bf16.msra.mxu1 %v430_v3  ;;  %864 = vmatpush3.bf16.msra.mxu0 %v373_v4  ;;  %s808_s28 = sshll.u32 %s1309_s25, 3  ;;  %vm367_vm2 = vcmask 64512   ;;  %vm425_vm3 = vcmask 195584   ;;  %v963_v13 = vld [vmem:[%s1297_s5 + $0x30] sm:$0xff]   ;;  %v964_v14 = vld [vmem:[%s1297_s5 + $0x28] sm:$0xff]   ;;  %v965_v15 = vld [vmem:[%s1297_s5 + $0x20] sm:$0xff]  }
  0x16   : > { %871 = vmatprep.subr.bf16.mxu1 %v1040_v1  ;;  %865 = vmatprep.mubr.msk.bf16.mxu0 %vm1041_vm1, %v1040_v1  ;;  %s353_s16 = scalar_lea.vmem %s1293_s1, %s808_s28  ;;  %s347_s22 = scalar_lea.vmem %s1292_s0, %s808_s28  ;;  %v966_v16 = vld [vmem:[%s1297_s5 + $0x18] sm:$0xff]   ;;  %v967_v17 = vld [vmem:[%s1297_s5 + $0x10] sm:$0xff]   ;;  %v968_v18 = vld [vmem:[%s1297_s5 + $0x8] sm:$0xff]  }
  0x17   : > { %873 = vmatprep.mubr.msk.bf16.mxu1 %vm1041_vm1, %v1040_v1  ;;  %877 = vmatprep.subr.bf16.mxu0 %v1040_v1  ;;  %v363_v7 = vld [vmem:[%s353_s16] sm:$0xff]  ;;  %v364_v8 = vld [vmem:[%s353_s16 + $0x8] sm:$0xff]  ;;  %v970_v20 = vld [vmem:[%s1299_s7 + $0x38] sm:$0xff]   ;;  %s728_s28 = sshll.u32 %s342_s27, 4  ;;  %s984_s25 = scalar_lea.vmem %s983_s24, 512  ;;  %s1245_s28 = int_to_ptr.vmem [resolvable:$true] %s728_s28 }
  0x18   : > { %v357_v9 = vld [vmem:[%s347_s22] sm:$0xff]  ;;  %v365_v10 = vpack.c.bf16 %v364_v8, %v363_v7  ;;  %v358_v11 = vld [vmem:[%s347_s22 + $0x8] sm:$0xff]  ;;  %v971_v21 = vld [vmem:[%s1299_s7 + $0x30] sm:$0xff]   ;;  %s978_s22 = scalar_lea.vmem %s1245_s28, 256  ;;  %p985_p0 = scmp.lt.s32.totalorder %s1245_s28, %s983_s24 }
  0x19   : > { %872 = vmatpush3.bf16.msra.mxu1 %v961_v5  ;;  %v359_v12 = vpack.c.bf16 %v358_v11, %v357_v9  ;;  %v969_v19 = vld [vmem:[%s1297_s5] sm:$0xff]   ;;  %v972_v22 = vld [vmem:[%s1299_s7 + $0x28] sm:$0xff]   ;;  %v974_v24 = vld [vmem:[%s1299_s7 + $0x18] sm:$0xff]   ;;  %p979_p11 = scmp.ne.s32.totalorder %s1245_s28, %s978_s22  ;;  %p986_p1 = scmp.lt.s32.totalorder %s984_s25, %s978_s22 }
  0x1a   : > { %897 = vmatprep.subr.bf16.mxu1 %v1040_v1  ;;  %866 = vmatmul.mubr.msk.bf16.vlgmr.msra.gmra.mxu0 %vm367_vm2, %v365_v10  ;;  %v973_v23 = vld [vmem:[%s1299_s7 + $0x20] sm:$0xff]   ;;  %v975_v41 = vld [vmem:[%s1299_s7 + $0x10] sm:$0xff]   ;;  %v976_v42 = vld [vmem:[%s1299_s7 + $0x8] sm:$0xff]  }
  0x1b   : > { %878 = vmatpush3.bf16.msra.mxu0 %v962_v6  ;;  %893 = vmatprep.mubr.msk.bf16.mxu0 %vm1041_vm1, %v1040_v1  ;;  %v815_v29 = vld [vmem:[%s1296_s4] ss:$0 sm:$0xff]  ;;  %p980_p12 = pnand %p979_p11, %p1133_p5  ;;  %p987_p2 = por %p986_p1, %p985_p0 }
  0x1c   : > { %874 = vmatmul.mubr.msk.bf16.vlgmr.msra.gmra.mxu1 %vm425_vm3, %v359_v12  ;;  %879 = vmatprep.subr.bf16.mxu0 %v1040_v1  ;;  %v977_v43 = vld [vmem:[%s1299_s7] sm:$0xff]  }
  0x1d   : > { %913 = vmatprep.mubr.msk.bf16.mxu1 %vm1041_vm1, %v1040_v1  ;;  %898 = vmatpush3.bf16.msra.mxu1 %v970_v20  ;;  %v816_v44 = vld [vmem:[%s1298_s6] ss:$0 sm:$0xff]  ;;  %p981_p13 = pneg %p980_p12 }
  0x1e   : > { %899 = vmatprep.subr.bf16.mxu1 %v1040_v1  ;;  %v825_v54 = vld [vmem:[%s1300_s8] ss:$0 sm:$0xff] }
  0x1f   : > { %880 = vmatpush3.bf16.msra.mxu0 %v963_v13  ;;  %p988_p3 = pnand %p987_p2, %p981_p13 }
  0x20   : > { %881 = vmatprep.subr.bf16.mxu0 %v1040_v1 }
  0x21   : > { %900 = vmatpush3.bf16.msra.mxu1 %v971_v21 }
  0x22   : > { %901 = vmatprep.subr.bf16.mxu1 %v1040_v1 }
  0x23   : > { %882 = vmatpush3.bf16.msra.mxu0 %v964_v14 }
  0x24   : > { %883 = vmatprep.subr.bf16.mxu0 %v1040_v1 }
  0x25   : > { %902 = vmatpush3.bf16.msra.mxu1 %v972_v22 }
  0x26   : > { %903 = vmatprep.subr.bf16.mxu1 %v1040_v1 }
  0x27   : > { %884 = vmatpush3.bf16.msra.mxu0 %v965_v15 }
  0x28   : > { %885 = vmatprep.subr.bf16.mxu0 %v1040_v1 }
  0x29   : > { %904 = vmatpush3.bf16.msra.mxu1 %v973_v23 }
  0x2a   : > { %905 = vmatprep.subr.bf16.mxu1 %v1040_v1 }
  0x2b   : > { %886 = vmatpush3.bf16.msra.mxu0 %v966_v16 }
  0x2c   : > { %887 = vmatprep.subr.bf16.mxu0 %v1040_v1 }
  0x2d   : > { %906 = vmatpush3.bf16.msra.mxu1 %v974_v24 }
  0x2e   : > { %907 = vmatprep.subr.bf16.mxu1 %v1040_v1 }
  0x2f   : > { %888 = vmatpush3.bf16.msra.mxu0 %v967_v17 }
  0x30   : > { %889 = vmatprep.subr.bf16.mxu0 %v1040_v1 }
  0x31   : > { %908 = vmatpush3.bf16.msra.mxu1 %v975_v41 }
  0x32   : > { %909 = vmatprep.subr.bf16.mxu1 %v1040_v1 }
  0x33   : > { %890 = vmatpush3.bf16.msra.mxu0 %v968_v18 }
  0x34   : > { %891 = vmatprep.subr.bf16.mxu0 %v1040_v1 }
  0x35   : > { %910 = vmatpush3.bf16.msra.mxu1 %v976_v42 }
  0x36   : > { %911 = vmatprep.subr.bf16.mxu1 %v1040_v1 }
  0x37   : > { %892 = vmatpush3.bf16.msra.mxu0 %v969_v19 }
  0x39   : > { %912 = vmatpush3.bf16.msra.mxu1 %v977_v43 }
  0xda   : > { %v409_v25 = vpop.f32.mrf.mxu0 }
  0xdc   : > { %v466_v26 = vpop.f32.mrf.mxu1  ;;  %v867_v28 = vpop.f32.mrf.mxu0 }
  0xdd   : > { %v467_v27 = vadd.f32 %v466_v26, %v409_v25 }
  0xde   : > { %v875_v30 = vpop.f32.mrf.mxu1  ;;  %v412_v31 = vpop.f32.mrf.mxu0 }
  0xdf   : > { %v480_v33 = vadd.f32 %v815_v29, %v467_v27 }
  0xe0   : > { %v469_v32 = vpop.f32.mrf.mxu1  ;;  %v868_v35 = vpop.f32.mrf.mxu0 }
  0xe1   : > { %v470_v34 = vadd.f32 %v469_v32, %v412_v31  ;;  %v482_v38 = vmax.f32 %v480_v33, 0.0 }
  0xe2   : > { %v876_v36 = vpop.f32.mrf.mxu1 }
  0xe3   : > { %v481_v37 = vadd.f32 %v815_v29, %v470_v34 }
  0xe5   : > { %v483_v39 = vmax.f32 %v481_v37, 0.0 }
  0xe7   : > { %v484_v40 = vpack.c.bf16 %v483_v39, %v482_v38 }
  0xe9   : > { %894 = vmatmul.mubr.bf16.vlgmr.msra.gmra.mxu0 %v484_v40 }
 0x1a9   : > { %v590_v45 = vpop.f32.mrf.mxu0 }
 0x1aa   : > { %v591_v47 = vadd.f32 %v816_v44, %v590_v45 }
 0x1ab   : > { %v895_v46 = vpop.f32.mrf.mxu0 }
 0x1ac   : > { %v597_v51 = vmax.f32 %v591_v47, 0.0 }
 0x1ad   : > { %v593_v48 = vpop.f32.mrf.mxu0 }
 0x1ae   : > { %v594_v49 = vadd.f32 %v816_v44, %v593_v48 }
 0x1af   : > { %v896_v50 = vpop.f32.mrf.mxu0 }
 0x1b0   : > { %v598_v52 = vmax.f32 %v594_v49, 0.0 }
 0x1b2   : > { %v599_v53 = vpack.c.bf16 %v598_v52, %v597_v51 }
 0x1b4   : > { %914 = vmatmul.mubr.bf16.vlgmr.msra.gmra.mxu1 %v599_v53 }
 0x274   : > { %v705_v55 = vpop.f32.mrf.mxu1 }
 0x275   : > { %v706_v56 = vadd.f32 %v825_v54, %v705_v55 }
 0x276   : > { %v915_v57 = vpop.f32.mrf.mxu1 }
 0x277   : > { %712 = vst [vmem:[%s342_s27] sm:$0xff] %v706_v56 }
 0x278   : > { %v708_v58 = vpop.f32.mrf.mxu1 }
 0x279   : > { %v709_v59 = vadd.f32 %v825_v54, %v708_v58 }
 0x27a   : > { %v916_v60 = vpop.f32.mrf.mxu1 }
 0x27b   : > { %713 = vst [vmem:[%s342_s27 + $0x8] sm:$0xff] %v709_v59 }
 0x27c   : > { %991 = shalt.err (!%p988_p3)
}
 0x27d   : > { %s992_s23 = scalar_lea.hbm %s1250_s17, 256  ;;  %s996_s29 = scalar_lea.hbm %s1301_s9, 1024 }
 0x27e   : > { %p993_p4 = scmp.ne.s32.totalorder %s1250_s17, %s992_s23  ;;  %p997_p9 = scmp.lt.s32.totalorder %s1250_s17, %s1301_s9 }
 0x27f   : > { %p998_p10 = scmp.lt.s32.totalorder %s996_s29, %s992_s23 }
 0x280   : > { %p994_p7 = pnand %p993_p4, %p1133_p5 }
 0x281   : > { %p999_p11 = por %p998_p10, %p997_p9 }
 0x282   : > { %p995_p8 = pneg %p994_p7 }
 0x284   : > { %p1000_p12 = pnand %p999_p11, %p995_p8 }
 0x286   : > { %1003 = shalt.err (!%p1000_p12)
}
 0x287   : > { %s1043_s22 = smov 128   ;;  %s1044_s13 = smov 8  }
 0x288   : > { %917 = dma.vmem_to_hbm [thread:$0]  (%p1133_p5), %s1245_s28, 256, %s1250_s17, %s1252_s21, %s1043_s22, %s1043_s22, %s1044_s13  }
 0x289 PF: > { %p923_p13 = scmp.ge.s32.totalorder %s1038_s12, 2  ;;  %s743_s24 = sand.u32 1, %s1026_s30  }
 0x28a   : > { %s744_s25 = scalar_lea.sflag [#allocation3], %s743_s24 }
 0x28b   : > { %p920_p0 = pnand %p923_p13, %p1137_p6 }
 0x28d   : > { %p921_p1 = pneg %p920_p0 }
 0x28f   : > { %1021 = dma.done.wait (%p921_p1), %s744_s25, 256  }
 0x290   : > { %1023 = vsyncadd (%p921_p1), %s744_s25, 4294967040  ;;  %p19_p2 = scmp.ge.s32.totalorder %s1120_s15, 6   ;;  %s1304_s30 = smov %s1030_s10 }
 0x291   : > { %s1305_s10 = smov %s1034_s11  ;;  %s1306_s11 = smov %s1131_s18 }
 0x292   : > { %s1307_s12 = smov %s1120_s15  ;;  %21 = sbr.rel (!%p19_p2) target bundleno = 3 (0x3), region = 94 }
 0x297   :  { %749 = vsyncpa [#allocation3], 1 }
 0x298   :  { %751 = vsyncpa [#allocation3 + $0x1], 1 }

</bundles_post_ra>
